<compile_context>
chip_gen: v7x
topology: tpu7x:2x2x1
jax: 0.10.0
libtpu: 0.0.40
codegen_flags: <defaults>
</compile_context>

<pallas_src>
import functools
import math

import jax
import jax.numpy as jnp
from jax.experimental import pallas as pl
from jax.experimental.pallas import tpu as pltpu

_LANE = 128                      # lane quantum (last dim)
_SUBLANE = 8                     # sublane quantum (second-to-last dim)
_VMEM_BUDGET = 12 * 1024 * 1024  # stay under the 16 MiB default scoped VMEM (v5e)
_TM_MAX = 512                    # large enough to sit near the HBM roofline


def _round_up(v, m):
    return (v + m - 1) // m * m


def _outputer_kernel(x_ref, w_ref, o_ref, *, n_valid):
    # FCLayer hot path: logits = x @ W^T (module defaults: bias=False, no batch_norm)
    logits = jnp.dot(x_ref[...], w_ref[...], preferred_element_type=jnp.float32)

    if n_valid is not None:
        # Mask lane-padded output columns so they do not perturb the softmax.
        col = jax.lax.broadcasted_iota(jnp.int32, logits.shape, 1)
        logits = jnp.where(col < n_valid, logits, -jnp.inf)

    # Numerically stable softmax over the output features (f32 throughout).
    m = jnp.max(logits, axis=-1, keepdims=True)
    e = jnp.exp(logits - m)
    s = jnp.sum(e, axis=-1, keepdims=True)
    # EUP approx reciprocal + one Newton step -> full f32 accuracy, no per-lane divide.
    r = pl.reciprocal(s, approx=True)
    r = r * (2.0 - s * r)
    o_ref[...] = (e * r).astype(o_ref.dtype)


def _choose_tm(m, k_pad, n_pad, itemsize):
    """Largest M-tile (multiple of 8, <= _TM_MAX) whose working set fits the budget."""
    weight_bytes = k_pad * n_pad * itemsize       # resident, single copy
    per_row = 2 * (k_pad + n_pad) * itemsize      # x + out tiles, double-buffered
    avail = max(_VMEM_BUDGET - weight_bytes, per_row * _SUBLANE)
    tm_cap = max(_SUBLANE, (avail // per_row) // _SUBLANE * _SUBLANE)
    return max(_SUBLANE, min(_TM_MAX, tm_cap, _round_up(m, _SUBLANE)))


def outputer_forward(x, weight, vectorized_type=None):
    """Mirror Outputer.forward.

    x: (..., in_size) when vectorized_type is None
    weight: (in_size, out_size)  == torch Linear weight.T
    """
    # TODO(synk): DEBUG_QUANTIZE running min/max/mean/std bookkeeping not implemented.
    # TODO(synk): binary=True (binarized FC weights) not implemented.
    # TODO(synk): for vocab-sized out_size (>~8k) the resident-weight scheme should
    #             switch to an N-tiled online-softmax variant.
    if vectorized_type is not None:
        vt = vectorized_type.lower()
        if vt == "concat":
            x_in = x.reshape(x.shape[0], -1)
        elif vt == "gap":
            x_in = jnp.mean(x, axis=1)
        else:
            raise ValueError(vectorized_type)
    else:
        x_in = x

    K = x_in.shape[-1]
    N = weight.shape[1]
    lead = x_in.shape[:-1]
    M = math.prod(lead) if lead else 1
    x2d = x_in.reshape(M, K)

    itemsize = jnp.dtype(x.dtype).itemsize
    K_pad = _round_up(K, _LANE)
    N_pad = _round_up(N, _LANE)
    TM = _choose_tm(M, K_pad, N_pad, itemsize)
    M_pad = _round_up(max(M, 1), TM)

    if (M_pad != M) or (K_pad != K):
        x2d = jnp.pad(x2d, ((0, M_pad - M), (0, K_pad - K)))
    w_p = weight
    if (K_pad != K) or (N_pad != N):
        w_p = jnp.pad(weight, ((0, K_pad - K), (0, N_pad - N)))

    kernel = functools.partial(
        _outputer_kernel, n_valid=(N if N_pad != N else None)
    )

    y2d = pl.pallas_call(
        kernel,
        out_shape=jax.ShapeDtypeStruct((M_pad, N_pad), x.dtype),
        grid=(M_pad // TM,),
        in_specs=[
            pl.BlockSpec((TM, K_pad), lambda i: (i, 0)),       # x tile, pipelined over M
            pl.BlockSpec((K_pad, N_pad), lambda i: (0, 0)),    # weight, resident in VMEM
        ],
        out_specs=pl.BlockSpec((TM, N_pad), lambda i: (i, 0)),
        compiler_params=pltpu.CompilerParams(
            dimension_semantics=("parallel",),  # rows independent -> split across v7x TCs
        ),
        cost_estimate=pl.CostEstimate(
            flops=2 * M_pad * K_pad * N_pad,
            transcendentals=M_pad * N_pad,
            bytes_accessed=(M_pad * K_pad + K_pad * N_pad + M_pad * N_pad) * itemsize,
        ),
    )(x2d, w_p)

    y2d = y2d[:M, :N]
    y = y2d.reshape(*lead, N)
    # torch: if len(x.size()) > 2: y = y.view(x.size(0), x.size(1), -1)
    # (x here is the post-vectorization tensor, matching the torch forward)
    if x_in.ndim > 2:
        y = y.reshape(x_in.shape[0], x_in.shape[1], -1)
    return y


if __name__ == "__main__":
    key = jax.random.PRNGKey(0)
    B, S, in_size, out_size = 2, 8, 32, 16
    kx, kw = jax.random.split(key)

    x = jax.random.normal(kx, (B, S, in_size), dtype=jnp.float32)
    # deterministic param init (torch Linear weight is [out, in]); keep transpose
    w_torch_layout = jax.random.normal(kw, (out_size, in_size), dtype=jnp.float32) * (
        1.0 / math.sqrt(in_size)
    )
    weight = w_torch_layout.T  # (in_size, out_size)

    # --- small case (single M tile, padded K/N) ---
    y = outputer_forward(x, weight, vectorized_type=None)
    jax.block_until_ready(y)
    assert y.shape == (B, S, out_size), y.shape
    ref = jax.nn.softmax(jnp.einsum("bsk,kn->bsn", x, weight), axis=-1)
    assert jnp.allclose(y, ref, atol=1e-5, rtol=1e-5), float(jnp.max(jnp.abs(y - ref)))

    # --- multi-tile case (exercises the M grid, row padding, pipelining) ---
    B2, S2 = 2, 300  # M = 600 -> TM = 512, grid = 2 after padding
    x2 = jax.random.normal(jax.random.PRNGKey(1), (B2, S2, in_size), dtype=jnp.float32)
    y2 = outputer_forward(x2, weight, vectorized_type=None)
    jax.block_until_ready(y2)
    assert y2.shape == (B2, S2, out_size), y2.shape
    ref2 = jax.nn.softmax(jnp.einsum("bsk,kn->bsn", x2, weight), axis=-1)
    assert jnp.allclose(y2, ref2, atol=1e-5, rtol=1e-5), float(jnp.max(jnp.abs(y2 - ref2)))

    print("KERNEL_OK")
</pallas_src>

<mosaic_0001>
module attributes {stable_mosaic.version = 11 : i64} {
  func.func @_outputer_kernel(%arg0: i32, %arg1: memref<16x128xf32, #tpu.memory_space<vmem>>, %arg2: memref<128x128xf32, #tpu.memory_space<vmem>>, %arg3: memref<16x128xf32, #tpu.memory_space<vmem>>) attributes {dimension_semantics = [#tpu.dimension_semantics<parallel>], iteration_bounds = array<i64: 1>, scalar_prefetch = 0 : i64, scratch_operands = 0 : i64, tpu.core_type = #tpu.core_type<tc>, window_params = [{transform_indices = @transform_0, window_bounds = array<i64: 16, 128>}, {pipeline_mode = #tpu.pipeline_mode<synchronous>, transform_indices = @transform_1, window_bounds = array<i64: 128, 128>}, {transform_indices = @transform_2, window_bounds = array<i64: 16, 128>}]} {
    %c0 = arith.constant 0 : index
    %c0_0 = arith.constant 0 : index
    %0 = vector.load %arg1[%c0, %c0_0] : memref<16x128xf32, #tpu.memory_space<vmem>>, vector<16x128xf32>
    %c0_1 = arith.constant 0 : index
    %c0_2 = arith.constant 0 : index
    %1 = vector.load %arg2[%c0_1, %c0_2] : memref<128x128xf32, #tpu.memory_space<vmem>>, vector<128x128xf32>
    %cst = arith.constant dense<0.000000e+00> : vector<16x128xf32>
    %2 = tpu.matmul %0, %1, %cst {dimension_numbers = #tpu.dot_dimension_numbers<[1], [0], [0], [1], [0, 0, 1, 1], [], []>} : vector<16x128xf32>, vector<128x128xf32>, vector<16x128xf32> -> vector<16x128xf32>
    %3 = tpu.iota {dimensions = array<i32: 1>} : vector<16x128xi32>
    %c16_i32 = arith.constant 16 : i32
    %4 = vector.broadcast %c16_i32 : i32 to vector<16x128xi32>
    %5 = arith.cmpi slt, %3, %4 : vector<16x128xi32>
    %cst_3 = arith.constant 0xFF800000 : f32
    %6 = vector.broadcast %cst_3 : f32 to vector<16x128xf32>
    %7 = arith.select %5, %2, %6 : vector<16x128xi1>, vector<16x128xf32>
    %cst_4 = arith.constant dense<0xFF800000> : vector<16xf32>
    %8 = vector.multi_reduction <maximumf>, %7, %cst_4 [1] : vector<16x128xf32> to vector<16xf32>
    %9 = vector.shape_cast %8 : vector<16xf32> to vector<16x1xf32>
    %10 = vector.broadcast %9 : vector<16x1xf32> to vector<16x128xf32>
    %11 = arith.subf %7, %10 : vector<16x128xf32>
    %12 = math.exp %11 : vector<16x128xf32>
    %cst_5 = arith.constant dense<0.000000e+00> : vector<16xf32>
    %13 = vector.multi_reduction <add>, %12, %cst_5 [1] : vector<16x128xf32> to vector<16xf32>
    %14 = vector.shape_cast %13 : vector<16xf32> to vector<16x1xf32>
    %15 = tpu.reciprocal %14 {approx = true} : vector<16x1xf32> -> vector<16x1xf32>
    %16 = arith.mulf %14, %15 : vector<16x1xf32>
    %cst_6 = arith.constant 2.000000e+00 : f32
    %17 = vector.broadcast %cst_6 : f32 to vector<16x1xf32>
    %18 = arith.subf %17, %16 : vector<16x1xf32>
    %19 = arith.mulf %15, %18 : vector<16x1xf32>
    %20 = vector.broadcast %19 : vector<16x1xf32> to vector<16x128xf32>
    %21 = arith.mulf %12, %20 : vector<16x128xf32>
    %c0_7 = arith.constant 0 : index
    %c0_8 = arith.constant 0 : index
    %22 = vector.load %arg3[%c0_7, %c0_8] : memref<16x128xf32, #tpu.memory_space<vmem>>, vector<16x128xf32>
    tpu.vector_store %arg3[%c0_7, %c0_8], %21 {strides = array<i32>} : memref<16x128xf32, #tpu.memory_space<vmem>>, vector<16x128xf32>,
    return
  }
  func.func @transform_0(%arg0: i32) -> (i32, i32) {
    %c0_i32 = arith.constant 0 : i32
    %c0_i32_0 = arith.constant 0 : i32
    return %arg0, %c0_i32 : i32, i32
  }
  func.func @transform_1(%arg0: i32) -> (i32, i32) {
    %c0_i32 = arith.constant 0 : i32
    %c0_i32_0 = arith.constant 0 : i32
    %c0_i32_1 = arith.constant 0 : i32
    return %c0_i32, %c0_i32_0 : i32, i32
  }
  func.func @transform_2(%arg0: i32) -> (i32, i32) {
    %c0_i32 = arith.constant 0 : i32
    %c0_i32_0 = arith.constant 0 : i32
    return %arg0, %c0_i32 : i32, i32
  }
}

</mosaic_0001>

<bundles_post_ra>
// kernel: tpu_custom_call.1
= control target key start
LH: loop header
LB: loop body
LE: loop exit
PB: predicated region body
PF: predicated region fallthrough
CT: control target
= control target key end

     0   :  { %7 = vsyncpa [#allocation3], 0  ;;  %s417_s0 = inlined_call_operand.hbm [shape: f32[16,128], index: 0, kind: input, shape index: {}]   ;;  %s418_s1 = inlined_call_operand.hbm [shape: f32[128,128], index: 1, kind: input, shape index: {}]   ;;  %s419_s2 = inlined_call_operand.hbm [shape: f32[16,128], index: 2, kind: output, shape index: {}]  }
   0x1   :  { %8 = vsyncpa [#allocation6], 0 }
   0x2   :  { %9 = vsyncpa [#allocation4], 0  ;;  %s352_s9 = smov [#allocation2]   ;;  %s280_s13 = scalar_lea.hbm %s417_s0, 256 }
   0x3   :  { %s15_s10 = sshll.u32 %s352_s9, 4  ;;  %p281_p0 = scmp.ne.s32.totalorder %s417_s0, %s280_s13  ;;  %s16_s10 = int_to_ptr.vmem [resolvable:$true] %s15_s10 }
   0x4   :  { %p284_p1 = scmp.lt.u32.totalorder %s280_s13, %s417_s0 }
   0x6   :  { %p286_p2 = pnand %p284_p1, %p281_p0 }
   0x8   :  { %289 = shalt.err (!%p286_p2)
}
   0x9   :  { %s290_s18 = scalar_lea.vmem %s16_s10, 256  ;;  %p295_p4 = scmp.lt.s32.totalorder %s16_s10, %s16_s10 }
   0xa   :  { %p291_p3 = scmp.ne.s32.totalorder %s16_s10, %s290_s18  ;;  %p296_p5 = scmp.lt.s32.totalorder %s290_s18, %s290_s18 }
   0xc   :  { %p297_p6 = por %p296_p5, %p295_p4 }
   0xe   :  { %p298_p7 = pnand %p297_p6, %p291_p3 }
  0x10   :  { %301 = shalt.err (!%p298_p7)
}
  0x11   :  { %s353_s19 = smov 128   ;;  %s354_s20 = smov 8  }
  0x12   :  { %21 = dma.hbm_to_vmem [thread:$0]  %s417_s0, 256, %s16_s10, [#allocation3], %s353_s19, %s353_s19, %s354_s20  }
  0x13   :  { %s355_s23 = smov [#allocation5]   ;;  %s302_s27 = scalar_lea.hbm %s418_s1, 2048 }
  0x14   :  { %s27_s24 = sshll.u32 %s355_s23, 4  ;;  %p303_p8 = scmp.ne.s32.totalorder %s418_s1, %s302_s27  ;;  %s28_s24 = int_to_ptr.vmem [resolvable:$true] %s27_s24 }
  0x15   :  { %p306_p9 = scmp.lt.u32.totalorder %s302_s27, %s418_s1 }
  0x17   :  { %p308_p10 = pnand %p306_p9, %p303_p8 }
  0x19   :  { %311 = shalt.err (!%p308_p10)
}
  0x1a   :  { %s312_s4 = scalar_lea.vmem %s28_s24, 2048  ;;  %p317_p12 = scmp.lt.s32.totalorder %s28_s24, %s28_s24 }
  0x1b   :  { %p313_p11 = scmp.ne.s32.totalorder %s28_s24, %s312_s4  ;;  %p318_p13 = scmp.lt.s32.totalorder %s312_s4, %s312_s4 }
  0x1d   :  { %p319_p0 = por %p318_p13, %p317_p12 }
  0x1f   :  { %p320_p1 = pnand %p319_p0, %p313_p11 }
  0x21   :  { %323 = shalt.err (!%p320_p1)
}
  0x22   :  { %33 = dma.hbm_to_vmem [thread:$0]  %s418_s1, 2048, %s28_s24, [#allocation6], %s353_s19, %s353_s19, %s354_s20  }
  0x23   :  { %346 = dma.done.wait [#allocation3], 256  }
  0x24   :  { %347 = vsyncadd [#allocation3], 4294967040 }
  0x25   :  { %348 = dma.done.wait [#allocation6], 2048  }
  0x26   :  { %349 = vsyncadd [#allocation6], 4294965248  ;;  %v42_v0 = vld [vmem:[#allocation5] sm:$0xff]  ;;  %v43_v1 = vld [vmem:[#allocation5 + $0x8] sm:$0xff]  ;;  %v133_v26 = vlaneseq  ;;  %s356_s1 = smov [#allocation7]  }
  0x27   :  { %v44_v2 = vld [vmem:[#allocation5 + $0x10] sm:$0xff]  ;;  %v235_v3 = vpack.c.bf16 %v43_v1, %v42_v0  ;;  %v45_v4 = vld [vmem:[#allocation5 + $0x18] sm:$0xff]  ;;  %v46_v6 = vld [vmem:[#allocation5 + $0x20] sm:$0xff]  ;;  %s169_s6 = sshll.u32 %s356_s1, 4  ;;  %s170_s6 = int_to_ptr.vmem [resolvable:$true] %s169_s6 }
  0x28   :  { %v239_v5 = vpack.c.bf16 %v45_v4, %v44_v2  ;;  %v47_v7 = vld [vmem:[#allocation5 + $0x28] sm:$0xff]  ;;  %v40_v9 = vld [vmem:[#allocation2] sm:$0xff]  ;;  %v49_v11 = vld [vmem:[#allocation5 + $0x38] sm:$0xff]  ;;  %v134_v27 = vand.u32 127, %v133_v26  ;;  %s324_s7 = scalar_lea.vmem %s170_s6, 256  ;;  %p329_p3 = scmp.lt.s32.totalorder %s170_s6, %s170_s6 }
  0x29   :  { %236 = vmatprep.subr.bf16.mxu0 %v235_v3  ;;  %v243_v8 = vpack.c.bf16 %v47_v7, %v46_v6  ;;  %v48_v10 = vld [vmem:[#allocation5 + $0x30] sm:$0xff]  ;;  %232 = vmatprep.mubr.f32.mxu0 %v40_v9  ;;  %v50_v13 = vld [vmem:[#allocation5 + $0x40] sm:$0xff]  ;;  %v51_v14 = vld [vmem:[#allocation5 + $0x48] sm:$0xff]  ;;  %p325_p2 = scmp.ne.s32.totalorder %s170_s6, %s324_s7  ;;  %p330_p4 = scmp.lt.s32.totalorder %s324_s7, %s324_s7 }
  0x2a   :  { %238 = vmatpush3.bf16.msra.mxu0 %v235_v3  ;;  %v247_v12 = vpack.c.bf16 %v49_v11, %v48_v10  ;;  %v251_v15 = vpack.c.bf16 %v51_v14, %v50_v13  ;;  %v52_v16 = vld [vmem:[#allocation5 + $0x50] sm:$0xff]  ;;  %v53_v17 = vld [vmem:[#allocation5 + $0x58] sm:$0xff]  ;;  %v54_v19 = vld [vmem:[#allocation5 + $0x60] sm:$0xff]  ;;  %vm135_vm0 = vcmp.lt.s32.totalorder %v134_v27, 16 }
  0x2b   :  { %240 = vmatprep.subr.bf16.mxu0 %v239_v5  ;;  %v255_v18 = vpack.c.bf16 %v53_v17, %v52_v16  ;;  %v55_v20 = vld [vmem:[#allocation5 + $0x68] sm:$0xff]  ;;  %v56_v22 = vld [vmem:[#allocation5 + $0x70] sm:$0xff]  ;;  %v57_v23 = vld [vmem:[#allocation5 + $0x78] sm:$0xff]  ;;  %p331_p5 = por %p330_p4, %p329_p3 }
  0x2c   :  { %v259_v21 = vpack.c.bf16 %v55_v20, %v54_v19  ;;  %v263_v24 = vpack.c.bf16 %v57_v23, %v56_v22  ;;  %v41_v25 = vld [vmem:[#allocation2 + $0x8] sm:$0xff] }
  0x2d   :  { %p332_p6 = pnand %p331_p5, %p325_p2 }
  0x2e   :  { %242 = vmatpush3.bf16.msra.mxu0 %v239_v5 }
  0x2f   :  { %244 = vmatprep.subr.bf16.mxu0 %v243_v8 }
  0x32   :  { %246 = vmatpush3.bf16.msra.mxu0 %v243_v8 }
  0x33   :  { %248 = vmatprep.subr.bf16.mxu0 %v247_v12 }
  0x36   :  { %250 = vmatpush3.bf16.msra.mxu0 %v247_v12 }
  0x37   :  { %252 = vmatprep.subr.bf16.mxu0 %v251_v15 }
  0x3a   :  { %254 = vmatpush3.bf16.msra.mxu0 %v251_v15 }
  0x3b   :  { %256 = vmatprep.subr.bf16.mxu0 %v255_v18 }
  0x3e   :  { %258 = vmatpush3.bf16.msra.mxu0 %v255_v18 }
  0x3f   :  { %260 = vmatprep.subr.bf16.mxu0 %v259_v21 }
  0x42   :  { %262 = vmatpush3.bf16.msra.mxu0 %v259_v21 }
  0x43   :  { %264 = vmatprep.subr.bf16.mxu0 %v263_v24 }
  0x46   :  { %266 = vmatpush3.bf16.msra.mxu0 %v263_v24 }
  0x49   :  { %233 = vmatmul.mubr.f32.vlgmr.msra.gmra.mrb[0].mxu0 %v41_v25 }
 0x11c   :  { %v234_v28 = vpop.f32.mrb[0].mxu0 }
 0x11d   :  { %v124_v29 = vpop.f32.mrb[1].mxu0  ;;  %v137_v31 = vsel %vm135_vm0, %v234_v28, -inf }
 0x11e   :  { %v136_v30 = vsel %vm135_vm0, %v124_v29, -inf }
 0x11f   :  { %138 = vmax.xlane.f32.xlu0 %v136_v30 }
 0x123   :  { %140 = vmax.xlane.f32.xlu0 %v137_v31 }
 0x1ac   :  { %v139_v32 = vpop.xlane.xlu0 %138 }
 0x1ad   :  { %v142_v33 = vsub.f32 %v136_v30, %v139_v32 }
 0x1af   :  { %v144_v34 = vmul.f32 1.442695, %v142_v33 }
 0x1b0   :  { %v141_v35 = vpop.xlane.xlu0 %140 }
 0x1b1   :  { %272 = vpow2.f32 %v144_v34  ;;  %v143_v36 = vsub.f32 %v137_v31, %v141_v35 }
 0x1b3   :  { %v146_v37 = vmul.f32 1.442695, %v143_v36 }
 0x1b5   :  { %274 = vpow2.f32 %v146_v37 }
 0x1bb   :  { %v273_v38 = vpop.eup %272 }
 0x1bc   :  { %148 = vadd.xlane.f32.xlu1 %v273_v38 }
 0x1bf   :  { %v275_v39 = vpop.eup %274 }
 0x1c0   :  { %150 = vadd.xlane.f32.xlu1 %v275_v39 }
 0x249   :  { %v149_v40 = vpop.xlane.xlu1 %148 }
 0x24a   :  { %276 = vrcp.f32 %v149_v40 }
 0x24d   :  { %v151_v41 = vpop.xlane.xlu1 %150 }
 0x24e   :  { %278 = vrcp.f32 %v151_v41 }
 0x254   :  { %v277_v42 = vpop.eup %276 }
 0x255   :  { %v154_v43 = vmul.f32 %v277_v42, %v149_v40 }
 0x257   :  { %v156_v44 = vsub.f32 2.0, %v154_v43 }
 0x258   :  { %v279_v45 = vpop.eup %278 }
 0x259   :  { %v158_v46 = vmul.f32 %v277_v42, %v156_v44  ;;  %v155_v47 = vmul.f32 %v279_v45, %v151_v41 }
 0x25b   :  { %v157_v48 = vsub.f32 2.0, %v155_v47  ;;  %v160_v49 = vmul.f32 %v273_v38, %v158_v46 }
 0x25d   :  { %v159_v50 = vmul.f32 %v279_v45, %v157_v48  ;;  %162 = vst [vmem:[#allocation7] sm:$0xff] %v160_v49 }
 0x25f   :  { %v161_v51 = vmul.f32 %v275_v39, %v159_v50 }
 0x261   :  { %163 = vst [vmem:[#allocation7 + $0x8] sm:$0xff] %v161_v51 }
 0x262   :  { %335 = shalt.err (!%p332_p6)
}
 0x263   :  { %s336_s10 = scalar_lea.hbm %s419_s2, 256 }
 0x264   :  { %p337_p7 = scmp.ne.s32.totalorder %s419_s2, %s336_s10  ;;  %p340_p8 = scmp.lt.u32.totalorder %s336_s10, %s419_s2 }
 0x266   :  { %p342_p9 = pnand %p340_p8, %p337_p7 }
 0x268   :  { %345 = shalt.err (!%p342_p9)
}
 0x269   :  { %175 = dma.vmem_to_hbm [thread:$0]  %s170_s6, 256, %s419_s2, [#allocation4], %s353_s19, %s353_s19, %s354_s20  }
 0x26a   :  { %350 = dma.done.wait [#allocation4], 256  }
 0x26b   :  { %351 = vsyncadd [#allocation4], 4294967040 }
 0x26c   :  { %179 = vsyncpa [#allocation3], 1 }
 0x26d   :  { %180 = vsyncpa [#allocation6], 1 }
 0x26e   :  { %181 = vsyncpa [#allocation4], 1 }

</bundles_post_ra>
